<compile_context>
chip_gen: v7x
topology: tpu7x:2x2x1
jax: 0.10.0
libtpu: 0.0.40
codegen_flags: <defaults>
</compile_context>

<pallas_src>
import jax
import jax.numpy as jnp
from jax.experimental import pallas as pl
from jax.experimental.pallas import tpu as pltpu


def _pair(v):
    return (v, v) if isinstance(v, int) else tuple(v)


def periodic_pad(x, pad_h, pad_w):
    """Periodic (wrap) padding on the last two dims of an NCHW tensor."""
    if pad_w > 0:
        front = x[..., :, x.shape[-1] - pad_w:]
        back = x[..., :, :pad_w]
        x = jnp.concatenate([front, x, back], axis=-1)
    if pad_h > 0:
        front = x[..., x.shape[-2] - pad_h:, :]
        back = x[..., :pad_h, :]
        x = jnp.concatenate([front, x, back], axis=-2)
    return x


def unfold_nchw_kmajor(y, kernel_size, dilation, stride):
    """torch.nn.functional.unfold(y, k, dilation, 0, stride) WITHOUT the
    trailing .transpose(1, 2): returns (B, K, L) with the K axis ordered
    (C slowest, then kh, then kw) to match PyTorch's unfold flattening."""
    B, C, Hp, Wp = y.shape
    kh, kw = kernel_size
    dh, dw = dilation
    sh, sw = stride
    out_h = (Hp - dh * (kh - 1) - 1) // sh + 1
    out_w = (Wp - dw * (kw - 1) - 1) // sw + 1

    rows = []
    for i in range(kh):
        cols = []
        for j in range(kw):
            sl = y[:, :,
                   i * dh: i * dh + (out_h - 1) * sh + 1: sh,
                   j * dw: j * dw + (out_w - 1) * sw + 1: sw]
            cols.append(sl)                      # (B, C, out_h, out_w)
        rows.append(jnp.stack(cols, axis=2))     # (B, C, kw, out_h, out_w)
    patches = jnp.stack(rows, axis=2)            # (B, C, kh, kw, out_h, out_w)
    K = C * kh * kw
    L = out_h * out_w
    return patches.reshape(B, K, L), out_h, out_w


# ---------------------------------------------------------------------------
# Kernels: grid = (B, nL, nK).  Blocks:
#   patches (1, tK, tL)   weight (1, C_out, tK)   bias (1, C_out, 1)
#   output  (1, C_out, tL)  -- same block for every k (accumulator-resident)
# ---------------------------------------------------------------------------
def _make_kernel(has_bias, multi_k):
    if multi_k:
        def kernel(*refs):
            if has_bias:
                p_ref, w_ref, b_ref, o_ref, acc_ref = refs
            else:
                p_ref, w_ref, o_ref, acc_ref = refs
            ki = pl.program_id(2)

            @pl.when(ki == 0)
            def _init():
                acc_ref[...] = jnp.zeros_like(acc_ref)

            # (C_out, tK) @ (tK, tL) -> (C_out, tL): lane-dense output, MXU.
            acc_ref[...] += jnp.dot(w_ref[0], p_ref[0],
                                    preferred_element_type=jnp.float32)

            @pl.when(ki == pl.num_programs(2) - 1)
            def _finalize():
                res = acc_ref[...]
                if has_bias:
                    res = res + b_ref[0]
                o_ref[0] = res.astype(o_ref.dtype)
    else:
        # Single K pass: no scratch, no pl.when, direct lane-dense store.
        def kernel(*refs):
            if has_bias:
                p_ref, w_ref, b_ref, o_ref = refs
            else:
                p_ref, w_ref, o_ref = refs
            res = jnp.dot(w_ref[0], p_ref[0],
                          preferred_element_type=jnp.float32)
            if has_bias:
                res = res + b_ref[0]
            o_ref[0] = res.astype(o_ref.dtype)
    return kernel


# ---------------------------------------------------------------------------
# Tile selection (generation-aware VMEM budget).
# ---------------------------------------------------------------------------
def _vmem_limit_bytes():
    """Scoped-VMEM limit with headroom; adapts to the chip (v7x has 64 MiB/TC,
    v5e/v6e have 128 MiB; defaults conservatively if the query fails)."""
    try:
        cap = pltpu.get_tpu_info().vmem_capacity_bytes
    except Exception:
        cap = 64 * 1024 * 1024            # assume the smallest (v7x) VMEM
    limit = min(cap - 16 * 1024 * 1024, 96 * 1024 * 1024)
    return max(limit, 32 * 1024 * 1024)


def _choose_tiles(K, L, C_out, itemsize, budget_bytes):
    """Pick (tK, tL).  tK divides K exactly (never a partial K block -> no
    garbage folded into the accumulator); tL is a multiple of 128 (partial
    last L tile is fine: masked stores, garbage columns never escape) unless
    the full L fits, in which case the full-dim block is used."""
    # --- K tile: only split very large K, and only on aligned exact divisors.
    tK = K
    if K > 2048:
        for cand in (2048, 1024, 512, 256, 128):
            if K % cand == 0:
                tK = cand
                break

    def footprint(tl, tk):
        patches = 2 * tk * tl * itemsize          # double-buffered input tile
        out = 2 * C_out * tl * itemsize           # double-buffered output tile
        acc = C_out * tl * 4                      # f32 accumulator scratch
        wgt = 2 * C_out * tk * itemsize           # weight block
        return patches + out + acc + wgt

    # --- L tile: lane-aligned, biggest that fits the budget (cap 4096).
    tL = min(pl.cdiv(L, 128) * 128, 4096)
    while tL > 128 and footprint(tL, tK) > budget_bytes:
        tL -= 128
    if tL >= L:
        tL = L                                    # full-dim block (always legal)
    return tK, tL


# ---------------------------------------------------------------------------
# Public wrapper == DynamicConv2d.forward
# ---------------------------------------------------------------------------
def dynamic_conv2d(x, weight, bias, *, in_channels, out_channels, kernel_size,
                   stride=1, padding=0, dilation=1, boundary_cond="periodic",
                   use_bf16_matmul=False):
    """Pallas implementation of DynamicConv2d.forward.

    x:      (B, C_in, H, W)           NCHW, matches PyTorch
    weight: (B, C_in*kh*kw, C_out)    (what PyTorch's weight.view(-1, K, C_out) gives)
    bias:   (B, C_out) or None
    returns (B, C_out, out_h, out_w)
    """
    kernel_size = _pair(kernel_size)
    stride = _pair(stride)
    padding = _pair(padding)
    dilation = _pair(dilation)
    kh, kw = kernel_size

    y = x
    if (padding[0] > 0 or padding[1] > 0) and boundary_cond == "periodic":
        assert padding[0] == (kh - 1) // 2 and padding[1] == (kw - 1) // 2
        y = periodic_pad(y, padding[0], padding[1])

    # TODO(synk): move the unfold into the kernel (manual DMA + shifted slices)
    # to cut the kh*kw-x blow-up in HBM traffic; kept as JAX glue for now.
    patches, out_h, out_w = unfold_nchw_kmajor(y, kernel_size, dilation, stride)
    B, K, L = patches.shape
    C_out = out_channels
    assert K == in_channels * kh * kw
    assert weight.shape == (B, K, C_out)

    # Pre-transpose the (small) per-sample weight to (B, C_out, K) so the
    # kernel matmul is (C_out, K) @ (K, tL) with L on the lane axis.
    w_t = jnp.transpose(weight, (0, 2, 1))

    mm_dtype = jnp.bfloat16 if use_bf16_matmul else x.dtype
    patches = patches.astype(mm_dtype)
    w_t = w_t.astype(mm_dtype)

    vmem_limit = _vmem_limit_bytes()
    tK, tL = _choose_tiles(K, L, C_out, jnp.dtype(mm_dtype).itemsize,
                           budget_bytes=vmem_limit // 2)
    nL = pl.cdiv(L, tL)
    nK = K // tK
    multi_k = nK > 1
    grid = (B, nL, nK)

    p_spec = pl.BlockSpec((1, tK, tL), lambda b, l, k: (b, k, l))
    w_spec = pl.BlockSpec((1, C_out, tK), lambda b, l, k: (b, 0, k))
    o_spec = pl.BlockSpec((1, C_out, tL), lambda b, l, k: (b, 0, l))
    scratch = [pltpu.VMEM((C_out, tL), jnp.float32)] if multi_k else []
    cparams = pltpu.CompilerParams(
        dimension_semantics=("parallel", "parallel", "arbitrary"),
        vmem_limit_bytes=int(vmem_limit))

    out_itemsize = jnp.dtype(x.dtype).itemsize
    cost = pl.CostEstimate(
        flops=2 * B * C_out * K * L,
        transcendentals=0,
        bytes_accessed=int(patches.size) * jnp.dtype(mm_dtype).itemsize
        + int(w_t.size) * jnp.dtype(mm_dtype).itemsize
        + B * C_out * L * out_itemsize)

    has_bias = bias is not None
    kernel = _make_kernel(has_bias, multi_k)

    in_specs = [p_spec, w_spec]
    inputs = [patches, w_t]
    if has_bias:
        bias_arr = bias.reshape(B, C_out, 1).astype(jnp.float32)  # add in f32
        in_specs.append(pl.BlockSpec((1, C_out, 1), lambda b, l, k: (b, 0, 0)))
        inputs.append(bias_arr)

    out_flat = pl.pallas_call(
        kernel,
        out_shape=jax.ShapeDtypeStruct((B, C_out, L), x.dtype),
        grid_spec=pltpu.PrefetchScalarGridSpec(
            num_scalar_prefetch=0,
            grid=grid,
            in_specs=in_specs,
            out_specs=o_spec,
            scratch_shapes=scratch),
        compiler_params=cparams,
        cost_estimate=cost,
    )(*inputs)

    # (B, C_out, L) is already NCHW-ordered: reshape, no transpose needed.
    return out_flat.reshape(B, C_out, out_h, out_w)


# ---------------------------------------------------------------------------
# Pure-JAX reference of the same forward (for sanity checking).
# ---------------------------------------------------------------------------
def _reference(x, weight, bias, **kw):
    kernel_size = _pair(kw["kernel_size"])
    padding = _pair(kw.get("padding", 0))
    dilation = _pair(kw.get("dilation", 1))
    stride = _pair(kw.get("stride", 1))
    y = x
    if (padding[0] > 0 or padding[1] > 0) and kw.get("boundary_cond",
                                                     "periodic") == "periodic":
        y = periodic_pad(y, padding[0], padding[1])
    patches, out_h, out_w = unfold_nchw_kmajor(y, kernel_size, dilation, stride)
    out = jnp.einsum("bkl,bkc->bcl", patches, weight)
    if bias is not None:
        out = out + bias[:, :, None]
    return out.reshape(x.shape[0], kw["out_channels"], out_h, out_w)


if __name__ == "__main__":
    # Small deterministic example consistent with the module's forward.
    B, C_in, H, W = 2, 4, 16, 16
    C_out, ks, pad = 4, 3, 1          # periodic conv, same spatial size out
    K = C_in * ks * ks

    key = jax.random.PRNGKey(0)
    kx, kw_, kb = jax.random.split(key, 3)
    x = jax.random.normal(kx, (B, C_in, H, W), dtype=jnp.float32)
    # Per-sample dynamic weight/bias (what PyTorch's weight.view(-1, K, C_out) expects).
    weight = jax.random.normal(kw_, (B, K, C_out), dtype=jnp.float32) * 0.1
    bias = jax.random.normal(kb, (B, C_out), dtype=jnp.float32) * 0.1

    cfg = dict(in_channels=C_in, out_channels=C_out, kernel_size=ks,
               stride=1, padding=pad, dilation=1, boundary_cond="periodic")

    out = dynamic_conv2d(x, weight, bias, **cfg)
    out = jax.block_until_ready(out)
    assert out.shape == (B, C_out, H, W), out.shape

    ref = _reference(x, weight, bias, **cfg)
    assert jnp.allclose(out, ref, atol=1e-4, rtol=1e-4), float(
        jnp.max(jnp.abs(out - ref)))

    # Also exercise the bias=None fast path (no zeros stream, no bias DMA).
    out_nb = jax.block_until_ready(dynamic_conv2d(x, weight, None, **cfg))
    ref_nb = _reference(x, weight, None, **cfg)
    assert jnp.allclose(out_nb, ref_nb, atol=1e-4, rtol=1e-4), float(
        jnp.max(jnp.abs(out_nb - ref_nb)))

    print("KERNEL_OK")
</pallas_src>

<mosaic_0001>
module attributes {stable_mosaic.version = 11 : i64} {
  func.func @kernel(%arg0: i32, %arg1: i32, %arg2: i32, %arg3: memref<1x36x256xf32, #tpu.memory_space<vmem>>, %arg4: memref<1x4x36xf32, #tpu.memory_space<vmem>>, %arg5: memref<1x4x1xf32, #tpu.memory_space<vmem>>, %arg6: memref<1x4x256xf32, #tpu.memory_space<vmem>>) attributes {dimension_semantics = [#tpu.dimension_semantics<parallel>, #tpu.dimension_semantics<parallel>, #tpu.dimension_semantics<arbitrary>], iteration_bounds = array<i64: 2, 1, 1>, scalar_prefetch = 0 : i64, scratch_operands = 0 : i64, tpu.core_type = #tpu.core_type<tc>, window_params = [{transform_indices = @transform_0, window_bounds = array<i64: 1, 36, 256>}, {transform_indices = @transform_1, window_bounds = array<i64: 1, 4, 36>}, {transform_indices = @transform_2, window_bounds = array<i64: 1, 4, 1>}, {transform_indices = @transform_3, window_bounds = array<i64: 1, 4, 256>}]} {
    %c0 = arith.constant 0 : index
    %c0_0 = arith.constant 0 : index
    %c0_1 = arith.constant 0 : index
    %0 = vector.load %arg4[%c0, %c0_0, %c0_1] : memref<1x4x36xf32, #tpu.memory_space<vmem>>, vector<1x4x36xf32>
    %1 = vector.shape_cast %0 : vector<1x4x36xf32> to vector<4x36xf32>
    %c0_2 = arith.constant 0 : index
    %c0_3 = arith.constant 0 : index
    %c0_4 = arith.constant 0 : index
    %2 = vector.load %arg3[%c0_2, %c0_3, %c0_4] : memref<1x36x256xf32, #tpu.memory_space<vmem>>, vector<1x36x256xf32>
    %3 = vector.shape_cast %2 : vector<1x36x256xf32> to vector<36x256xf32>
    %cst = arith.constant dense<0.000000e+00> : vector<4x256xf32>
    %4 = tpu.matmul %1, %3, %cst {dimension_numbers = #tpu.dot_dimension_numbers<[1], [0], [0], [1], [0, 0, 1, 1], [], []>} : vector<4x36xf32>, vector<36x256xf32>, vector<4x256xf32> -> vector<4x256xf32>
    %c0_5 = arith.constant 0 : index
    %c0_6 = arith.constant 0 : index
    %c0_7 = arith.constant 0 : index
    %5 = vector.load %arg5[%c0_5, %c0_6, %c0_7] : memref<1x4x1xf32, #tpu.memory_space<vmem>>, vector<1x4x1xf32>
    %6 = vector.shape_cast %5 : vector<1x4x1xf32> to vector<4x1xf32>
    %7 = vector.broadcast %6 : vector<4x1xf32> to vector<4x256xf32>
    %8 = arith.addf %4, %7 : vector<4x256xf32>
    %c0_8 = arith.constant 0 : index
    %c0_9 = arith.constant 0 : index
    %c0_10 = arith.constant 0 : index
    %9 = vector.load %arg6[%c0_8, %c0_9, %c0_10] : memref<1x4x256xf32, #tpu.memory_space<vmem>>, vector<1x4x256xf32>
    %10 = vector.shape_cast %9 : vector<1x4x256xf32> to vector<4x256xf32>
    %11 = vector.shape_cast %8 : vector<4x256xf32> to vector<1x4x256xf32>
    tpu.vector_store %arg6[%c0_8, %c0_9, %c0_10], %11 {strides = array<i32>} : memref<1x4x256xf32, #tpu.memory_space<vmem>>, vector<1x4x256xf32>,
    return
  }
  func.func @transform_0(%arg0: i32, %arg1: i32, %arg2: i32) -> (i32, i32, i32) {
    %c0_i32 = arith.constant 0 : i32
    return %arg0, %arg2, %arg1 : i32, i32, i32
  }
  func.func @transform_1(%arg0: i32, %arg1: i32, %arg2: i32) -> (i32, i32, i32) {
    %c0_i32 = arith.constant 0 : i32
    %c0_i32_0 = arith.constant 0 : i32
    return %arg0, %c0_i32, %arg2 : i32, i32, i32
  }
  func.func @transform_2(%arg0: i32, %arg1: i32, %arg2: i32) -> (i32, i32, i32) {
    %c0_i32 = arith.constant 0 : i32
    %c0_i32_0 = arith.constant 0 : i32
    %c0_i32_1 = arith.constant 0 : i32
    return %arg0, %c0_i32, %c0_i32_0 : i32, i32, i32
  }
  func.func @transform_3(%arg0: i32, %arg1: i32, %arg2: i32) -> (i32, i32, i32) {
    %c0_i32 = arith.constant 0 : i32
    %c0_i32_0 = arith.constant 0 : i32
    return %arg0, %c0_i32, %arg1 : i32, i32, i32
  }
}

</mosaic_0001>

<bundles_post_ra>
// kernel: tpu_custom_call.1
= control target key start
LH: loop header
LB: loop body
LE: loop exit
PB: predicated region body
PF: predicated region fallthrough
CT: control target
= control target key end

     0   :  { %8 = vsyncpa [#allocation3], 0  ;;  %s810_s0 = inlined_call_operand.vmem [shape: f32[2,36,256], index: 0, kind: input, shape index: {}]   ;;  %s811_s1 = inlined_call_operand.vmem [shape: f32[2,4,36], index: 1, kind: input, shape index: {}]   ;;  %s812_s2 = inlined_call_operand.vmem [shape: f32[2,4,1], index: 2, kind: input, shape index: {}]   ;;  %s813_s3 = inlined_call_operand.hbm [shape: f32[2,4,256], index: 3, kind: output, shape index: {}]  }
   0x1   :  { %10 = vsyncpa [#allocation3 + $0x1], 0  ;;  %s692_s12 = smov 0   ;;  %s694_s13 = smov 0  }
   0x2   :  { %s696_s14 = smov 0   ;;  %s698_s15 = smov 0  }
   0x3   :  { %s700_s16 = smov 0   ;;  %s702_s17 = smov 0  }
   0x4 LB: > { %s504_s18 = sadd.s32 4294967295, %s667_s17   ;;  %s505_s19 = sadd.s32 4294967294, %s667_s17   ;;  %s667_s17 = sphi %s702_s17, %s16_s17   ;;  %s663_s16 = sphi %s700_s16, %s820_s16   ;;  %s659_s15 = sphi %s698_s15, %s819_s15   ;;  %s655_s14 = sphi %s696_s14, %s818_s14   ;;  %s651_s13 = sphi %s694_s13, %s817_s13   ;;  %s647_s12 = sphi %s692_s12, %s816_s12  }
   0x5   : > { %s35_s20 = sadd.s32 1, %s663_s16  ;;  %s128_s21 = sadd.s32 1, %s655_s14 }
   0x6   : > { %p37_p0 = scmp.ge.s32.totalorder %s35_s20, 2  ;;  %p138_p1 = scmp.ne.s32.totalorder %s655_s14, %s651_s13 }
   0x7   : > { %p139_p2 = scmp.eq.s32.totalorder %s504_s18, 1  ;;  %p144_p3 = scmp.ne.s32.totalorder %s651_s13, %s647_s12 }
   0x8   : > { %s822_s20 = smov (%p37_p0, %s35_s20), 0  ;;  %p145_p5 = scmp.eq.s32.totalorder %s505_s19, 1 }
   0x9   : > { %p732_p4 = por %p139_p2, %p138_p1  ;;  %s123_s23 = ssub.s32 %s663_s16, %s822_s20 }
   0xa   : > { %p508_p6 = scmp.ge.s32.totalorder %s667_s17, 1  ;;  %p126_p7 = scmp.eq.s32.totalorder %s123_s23, 0 }
   0xb   : > { %p739_p8 = por %p145_p5, %p144_p3  ;;  %p199_p9 = scmp.lt.s32.totalorder %s667_s17, 3 }
   0xc   : > { %s745_s25 = scalar_select %p126_p7, %s655_s14, %s128_s21  }
   0xd   : > { %p200_p10 = pnand %p508_p6, %p199_p9 }
   0xe   : > { %p245_p11 = scmp.lt.s32.totalorder (!%p200_p10), %s659_s15, 1  ;;  %v669_v0 = vmov (!%p200_p10), 0.0   ;;  %v670_v1 = vmov (!%p200_p10), 0   ;;  %vm292_vm0 = vcmask (!%p200_p10), 1043456   ;;  %vm288_vm1 = vcmask (!%p200_p10), 293888   ;;  %s240_s11 = sand.u32 (!%p200_p10), 1, %s651_s13  }
   0xf   : > { %203 = sbr.rel (%p200_p10) target bundleno = 271 (0x10f), region = 32  ;;  %363 = vmatprep.mubr.f32.mxu0 (!%p200_p10), %v669_v0  ;;  %588 = vset.pattern.permute.xlu0 (!%p200_p10), %v670_v1  ;;  %s509_s18 = sshll.u32 (!%p200_p10), %s240_s11, 3 }
  0x10   : > { %s521_s19 = sshll.u32 (!%p200_p10), %s659_s15, 7  ;;  %s242_s21 = scalar_lea.vmem (!%p200_p10), [#allocation2], %s509_s18 }
  0x11   : > { %s392_s23 = sshll.u32 (!%p200_p10), %s242_s21, 4  ;;  %s376_s29 = scalar_lea.sflag (!%p200_p10), [#allocation3], %s240_s11  ;;  %s765_s23 = int_to_ptr.vmem [resolvable:$true] %s392_s23 }
  0x12   : > { %s589_s30 = scalar_lea.vmem (!%p200_p10), %s765_s23, 128 }
  0x13   : > { %p590_p12 = scmp.ne.s32.totalorder (!%p200_p10), %s765_s23, %s589_s30 }
  0x15   : > { %p591_p13 = pnand (!%p200_p10), %p590_p12, %p732_p4 }
  0x16   : > { %s246_s26 = scalar_select %p245_p11, %s659_s15, 1 }
  0x17   : > { %p592_p0 = pneg %p591_p13  ;;  %s671_s15 = smov [#allocation2]  }
  0x18   : > { %s530_s27 = smul.u32 80, %s246_s26  ;;  %s511_s28 = sshll.u32 %s246_s26, 2 }
  0x19   : > { %s269_s4 = scalar_lea.vmem %s812_s2, %s511_s28  ;;  %s265_s10 = scalar_lea.vmem %s811_s1, %s511_s28 }
  0x1a   : > { %s256_s7 = scalar_lea.vmem %s810_s0, %s530_s27  ;;  %v282_v2 = vld [vmem:[%s269_s4] sm:$0xf]  ;;  %s763_s28 = scalar_lea.hbm %s813_s3, %s521_s19 }
  0x1b   : > { %v273_v3 = vld [vmem:[%s256_s7 + $0x8] sm:$0xff]  ;;  %v275_v4 = vld [vmem:[%s256_s7 + $0x18] sm:$0xff]  ;;  %v272_v5 = vld [vmem:[%s256_s7] sm:$0xff]  ;;  %285 = vperm.xlu0 %588, %v282_v2   ;;  %s593_s4 = sshll.u32 %s671_s15, 4  ;;  %s594_s4 = int_to_ptr.vmem [resolvable:$false] %s593_s4 }
  0x1c   : > { %v522_v6 = vpack.c.bf16 %v275_v4, %v273_v3  ;;  %v274_v7 = vld [vmem:[%s256_s7 + $0x10] sm:$0xff]  ;;  %v277_v8 = vld [vmem:[%s256_s7 + $0x28] sm:$0xff]  ;;  %v279_v9 = vld [vmem:[%s256_s7 + $0x38] sm:$0xff]  ;;  %s595_s5 = scalar_lea.vmem %s594_s4, 256  ;;  %p596_p1 = scmp.lt.s32.totalorder %s765_s23, %s594_s4 }
  0x1d   : > { %v524_v10 = vpack.c.bf16 %v274_v7, %v272_v5  ;;  %v526_v11 = vpack.c.bf16 %v279_v9, %v277_v8  ;;  %v276_v12 = vld [vmem:[%s256_s7 + $0x20] sm:$0xff]  ;;  %v278_v13 = vld [vmem:[%s256_s7 + $0x30] sm:$0xff]  ;;  %v281_v15 = vld [vmem:[%s256_s7 + $0x48] sm:$0xf]  ;;  %p597_p2 = scmp.lt.s32.totalorder %s595_s5, %s589_s30 }
  0x1e   : > { %523 = vmatprep.subr.bf16.mxu0 %v522_v6  ;;  %v528_v14 = vpack.c.bf16 %v278_v13, %v276_v12  ;;  %v280_v16 = vld [vmem:[%s256_s7 + $0x40] sm:$0xf] }
  0x1f   : > { %525 = vmatpush1.bf16.msra.mxu0 %v524_v10  ;;  %v271_v17 = vld [vmem:[%s265_s10] sm:$0xf]  ;;  %p598_p3 = por %p597_p2, %p596_p1 }
  0x20   : > { %527 = vmatprep.subr.bf16.mxu0 %v526_v11 }
  0x21   : > { %p599_p5 = pnand %p598_p3, %p592_p0 }
  0x23   : > { %529 = vmatpush1.bf16.msra.mxu0 %v528_v14 }
  0x24   : > { %513 = vmatprep.subr.msk.mxu0 %vm292_vm0, %v281_v15 }
  0x27   : > { %514 = vmatpush1.msk.msra.mxu0 %vm292_vm0, %v280_v16 }
  0x28   : > { %515 = vmatmul.mubr.msk.f32.vlgmr.msra.gmra.mrb[0].mxu0 %vm288_vm1, %v271_v17 }
  0x9a   : > { %v286_v18 = vpop.permute.xlu0 %285 }
  0xfb   : > { %v365_v19 = vpop.f32.mrb[0].mxu0 }
  0xfc   : > { %v366_v20 = vadd.f32 %v365_v19, %v286_v18  ;;  %v367_v21 = vpop.f32.mrb[1].mxu0 }
  0xfd   : > { %v368_v22 = vadd.f32 %v367_v21, %v286_v18 }
  0xff   : > { %v372_v23 = vcombine.low %v366_v20, %v368_v22 }
 0x101   : > { %374 = vst [vmem:[%s242_s21] sm:$0xff] %v372_v23 }
 0x102   : > { %602 = shalt.err (!%p599_p5)
}
 0x103   : > { %s603_s6 = scalar_lea.hbm %s763_s28, 128  ;;  %s607_s9 = scalar_lea.hbm %s813_s3, 256 }
 0x104   : > { %p604_p6 = scmp.ne.s32.totalorder %s763_s28, %s603_s6  ;;  %p608_p10 = scmp.lt.u32.totalorder %s763_s28, %s813_s3 }
 0x105   : > { %p609_p11 = scmp.lt.u32.totalorder %s607_s9, %s603_s6  ;;  %p611_p13 = scmp.lt.u32.totalorder %s603_s6, %s763_s28 }
 0x106   : > { %p605_p7 = pnand %p604_p6, %p732_p4 }
 0x107   : > { %p610_p12 = por %p609_p11, %p608_p10 }
 0x108   : > { %p606_p9 = pneg %p605_p7 }
 0x109   : > { %p612_p0 = por %p611_p13, %p610_p12 }
 0x10b   : > { %p613_p1 = pnand %p612_p0, %p606_p9 }
 0x10d   : > { %616 = shalt.err (!%p613_p1)
}
 0x10e   : > { %531 = dma.vmem_to_hbm [thread:$0]  (%p732_p4), %s765_s23, 128, %s763_s28, %s376_s29  }
 0x10f PF: > { %p537_p2 = scmp.ge.s32.totalorder %s667_s17, 2  ;;  %s404_s18 = sand.u32 1, %s647_s12  }
 0x110   : > { %s405_s19 = scalar_lea.sflag [#allocation3], %s404_s18 }
 0x111   : > { %p534_p3 = pnand %p537_p2, %p739_p8 }
 0x113   : > { %642 = dma.done.wait (!%p534_p3), %s405_s19, 128  }
 0x114   : > { %644 = vsyncadd (!%p534_p3), %s405_s19, 4294967168  ;;  %s16_s17 = sadd.s32 1, %s667_s17   ;;  %s816_s12 = smov %s651_s13 }
 0x115   : > { %p13_p5 = scmp.ge.s32.totalorder %s16_s17, 4   ;;  %s817_s13 = smov %s655_s14 }
 0x116   : > { %s818_s14 = smov %s745_s25  ;;  %s819_s15 = smov %s663_s16 }
 0x117   : > { %s820_s16 = smov %s822_s20  ;;  %15 = sbr.rel (!%p13_p5) target bundleno = 4 (0x4), region = 73 }
 0x11e   :  { %410 = vsyncpa [#allocation3], 1 }
 0x11f   :  { %412 = vsyncpa [#allocation3 + $0x1], 1 }

</bundles_post_ra>
